<compile_context>
chip_gen: v7x
topology: tpu7x:2x2x1
jax: 0.10.0
libtpu: 0.0.40
codegen_flags: <defaults>
</compile_context>

<pallas_src>
import functools

import jax
import jax.numpy as jnp
from jax.experimental import pallas as pl
from jax.experimental.pallas import tpu as pltpu


def mlp_kernel(xT_ref, w1_ref, b1_ref, w2_ref, b2_ref, o_ref):
    # Layer 1: (30, 20) bf16 @ (20, TB) bf16 -> (30, TB) f32 on the MXU.
    h = jnp.dot(w1_ref[...], xT_ref[...], preferred_element_type=jnp.float32)
    h = jnp.maximum(h + b1_ref[...], 0.0)
    # Layer 2: (10, 30) f32 @ (30, TB) f32 -> (10, TB) f32.
    z = jnp.dot(w2_ref[...], h, preferred_element_type=jnp.float32)
    z = jnp.maximum(z + b2_ref[...], 0.0)
    # Softmax over the feature (sublane) axis == torch Softmax(dim=1).
    m = jnp.max(z, axis=0, keepdims=True)
    e = jnp.exp(z - m)
    denom = jnp.sum(e, axis=0, keepdims=True)
    # Exact f32 divide: keeps row sums == 1 to f32 precision (approx reciprocal
    # was too loose). The kernel is mem-bound, so the extra VALU work is free.
    o_ref[...] = (e / denom).astype(o_ref.dtype)


@functools.partial(jax.jit, static_argnames=("tb",))
def neural_network_forward(x, w1, b1, w2, b2, *, tb=1024):
    """x: (B, 20) f32. PyTorch-layout params: w1 (30, 20), b1 (30,), w2 (10, 30), b2 (10,)."""
    B, d_in = x.shape
    d_h = w1.shape[0]
    d_out = w2.shape[0]

    # Batch on the lane axis; stream x as bf16 (native MXU dtype, half the HBM traffic).
    xT = x.T.astype(jnp.bfloat16)                      # (d_in, B)
    w1b = w1.astype(jnp.bfloat16)
    b1c = b1.reshape(d_h, 1).astype(jnp.float32)
    w2f = w2.astype(jnp.float32)
    b2c = b2.reshape(d_out, 1).astype(jnp.float32)

    # Batch tile: one full-B block for small batches; otherwise a multiple of 128
    # lanes. Per-tile VMEM is ~100 KiB at tb=1024 (even double-buffered), far under
    # every chip's scoped-VMEM default, so no vmem_limit override is needed.
    if B <= tb:
        TB, Bp = B, B
    else:
        TB = tb
        Bp = pl.cdiv(B, TB) * TB
        if Bp != B:
            xT = jnp.pad(xT, ((0, 0), (0, Bp - B)))

    grid = (Bp // TB,)
    out = pl.pallas_call(
        mlp_kernel,
        out_shape=jax.ShapeDtypeStruct((d_out, Bp), jnp.float32),
        grid=grid,
        in_specs=[
            pl.BlockSpec((d_in, TB), lambda i: (0, i)),    # x tiles stream per grid step
            pl.BlockSpec((d_h, d_in), lambda i: (0, 0)),   # weights/biases: resident,
            pl.BlockSpec((d_h, 1), lambda i: (0, 0)),      # DMA'd once (constant index_map)
            pl.BlockSpec((d_out, d_h), lambda i: (0, 0)),
            pl.BlockSpec((d_out, 1), lambda i: (0, 0)),
        ],
        out_specs=pl.BlockSpec((d_out, TB), lambda i: (0, i)),  # last dim = TB: lane-dense stores
        compiler_params=pltpu.CompilerParams(
            dimension_semantics=("parallel",),             # shard batch tiles across cores
        ),
    )(xT, w1b, b1c, w2f, b2c)

    return out[:, :B].T                                    # back to (B, d_out)


def init_params(key):
    """Deterministic init mimicking PyTorch nn.Linear default (U[-1/sqrt(fan_in), +]), torch layout."""
    k1, k2, k3, k4 = jax.random.split(key, 4)
    bound1 = 1.0 / jnp.sqrt(20.0)
    bound2 = 1.0 / jnp.sqrt(30.0)
    w1 = jax.random.uniform(k1, (30, 20), jnp.float32, -bound1, bound1)
    b1 = jax.random.uniform(k2, (30,), jnp.float32, -bound1, bound1)
    w2 = jax.random.uniform(k3, (10, 30), jnp.float32, -bound2, bound2)
    b2 = jax.random.uniform(k4, (10,), jnp.float32, -bound2, bound2)
    return w1, b1, w2, b2


if __name__ == "__main__":
    key = jax.random.PRNGKey(0)
    kx, kp = jax.random.split(key)
    B = 256
    x = jax.random.normal(kx, (B, 20), jnp.float32)
    w1, b1, w2, b2 = init_params(kp)

    # tb=128 -> grid of 2 batch tiles, exercising the streamed/pipelined path.
    out = neural_network_forward(x, w1, b1, w2, b2, tb=128)
    out = jax.block_until_ready(out)
    assert out.shape == (B, 10)

    # Softmax rows sum to 1 (exact f32 divide -> tight tolerance).
    assert jnp.allclose(jnp.sum(out, axis=1), 1.0, atol=1e-4), float(
        jnp.max(jnp.abs(jnp.sum(out, axis=1) - 1.0)))

    # Reference with the same bf16 MXU-input casting as the kernel.
    h_ref = jnp.maximum(
        jnp.dot(w1.astype(jnp.bfloat16), x.T.astype(jnp.bfloat16),
                preferred_element_type=jnp.float32) + b1[:, None], 0.0)
    z_ref = jnp.maximum(
        jnp.dot(w2, h_ref, preferred_element_type=jnp.float32) + b2[:, None], 0.0)
    ref = jax.nn.softmax(z_ref, axis=0).T
    assert jnp.allclose(out, ref, atol=2e-3), float(jnp.max(jnp.abs(out - ref)))

    # Full-f32 PyTorch-semantics reference (looser tolerance due to bf16 MXU inputs).
    h32 = jnp.maximum(x @ w1.T + b1, 0.0)
    z32 = jnp.maximum(h32 @ w2.T + b2, 0.0)
    ref32 = jax.nn.softmax(z32, axis=1)
    assert jnp.allclose(out, ref32, atol=5e-2), float(jnp.max(jnp.abs(out - ref32)))

    print("KERNEL_OK")
</pallas_src>

<mosaic_0001>
module attributes {stable_mosaic.version = 11 : i64} {
  func.func @mlp_kernel(%arg0: i32, %arg1: memref<20x128xbf16, #tpu.memory_space<vmem>>, %arg2: memref<30x20xbf16, #tpu.memory_space<vmem>>, %arg3: memref<30x1xf32, #tpu.memory_space<vmem>>, %arg4: memref<10x30xf32, #tpu.memory_space<vmem>>, %arg5: memref<10x1xf32, #tpu.memory_space<vmem>>, %arg6: memref<10x128xf32, #tpu.memory_space<vmem>>) attributes {dimension_semantics = [#tpu.dimension_semantics<parallel>], iteration_bounds = array<i64: 2>, scalar_prefetch = 0 : i64, scratch_operands = 0 : i64, tpu.core_type = #tpu.core_type<tc>, window_params = [{transform_indices = @transform_0, window_bounds = array<i64: 20, 128>}, {pipeline_mode = #tpu.pipeline_mode<synchronous>, transform_indices = @transform_1, window_bounds = array<i64: 30, 20>}, {pipeline_mode = #tpu.pipeline_mode<synchronous>, transform_indices = @transform_2, window_bounds = array<i64: 30, 1>}, {pipeline_mode = #tpu.pipeline_mode<synchronous>, transform_indices = @transform_3, window_bounds = array<i64: 10, 30>}, {pipeline_mode = #tpu.pipeline_mode<synchronous>, transform_indices = @transform_4, window_bounds = array<i64: 10, 1>}, {transform_indices = @transform_5, window_bounds = array<i64: 10, 128>}]} {
    %c0 = arith.constant 0 : index
    %c0_0 = arith.constant 0 : index
    %0 = vector.load %arg2[%c0, %c0_0] : memref<30x20xbf16, #tpu.memory_space<vmem>>, vector<30x20xbf16>
    %c0_1 = arith.constant 0 : index
    %c0_2 = arith.constant 0 : index
    %1 = vector.load %arg1[%c0_1, %c0_2] : memref<20x128xbf16, #tpu.memory_space<vmem>>, vector<20x128xbf16>
    %cst = arith.constant dense<0.000000e+00> : vector<30x128xf32>
    %2 = tpu.matmul %0, %1, %cst {dimension_numbers = #tpu.dot_dimension_numbers<[1], [0], [0], [1], [0, 0, 1, 1], [], []>} : vector<30x20xbf16>, vector<20x128xbf16>, vector<30x128xf32> -> vector<30x128xf32>
    %c0_3 = arith.constant 0 : index
    %c0_4 = arith.constant 0 : index
    %3 = vector.load %arg3[%c0_3, %c0_4] : memref<30x1xf32, #tpu.memory_space<vmem>>, vector<30x1xf32>
    %4 = vector.broadcast %3 : vector<30x1xf32> to vector<30x128xf32>
    %5 = arith.addf %2, %4 : vector<30x128xf32>
    %cst_5 = arith.constant 0.000000e+00 : f32
    %6 = vector.broadcast %cst_5 : f32 to vector<30x128xf32>
    %7 = arith.maximumf %5, %6 : vector<30x128xf32>
    %c0_6 = arith.constant 0 : index
    %c0_7 = arith.constant 0 : index
    %8 = vector.load %arg4[%c0_6, %c0_7] : memref<10x30xf32, #tpu.memory_space<vmem>>, vector<10x30xf32>
    %cst_8 = arith.constant dense<0.000000e+00> : vector<10x128xf32>
    %9 = tpu.matmul %8, %7, %cst_8 {dimension_numbers = #tpu.dot_dimension_numbers<[1], [0], [0], [1], [0, 0, 1, 1], [], []>} : vector<10x30xf32>, vector<30x128xf32>, vector<10x128xf32> -> vector<10x128xf32>
    %c0_9 = arith.constant 0 : index
    %c0_10 = arith.constant 0 : index
    %10 = vector.load %arg5[%c0_9, %c0_10] : memref<10x1xf32, #tpu.memory_space<vmem>>, vector<10x1xf32>
    %11 = vector.broadcast %10 : vector<10x1xf32> to vector<10x128xf32>
    %12 = arith.addf %9, %11 : vector<10x128xf32>
    %cst_11 = arith.constant 0.000000e+00 : f32
    %13 = vector.broadcast %cst_11 : f32 to vector<10x128xf32>
    %14 = arith.maximumf %12, %13 : vector<10x128xf32>
    %cst_12 = arith.constant dense<0xFF800000> : vector<128xf32>
    %15 = vector.multi_reduction <maximumf>, %14, %cst_12 [0] : vector<10x128xf32> to vector<128xf32>
    %16 = vector.shape_cast %15 : vector<128xf32> to vector<1x128xf32>
    %17 = vector.broadcast %16 : vector<1x128xf32> to vector<10x128xf32>
    %18 = arith.subf %14, %17 : vector<10x128xf32>
    %19 = math.exp %18 : vector<10x128xf32>
    %cst_13 = arith.constant dense<0.000000e+00> : vector<128xf32>
    %20 = vector.multi_reduction <add>, %19, %cst_13 [0] : vector<10x128xf32> to vector<128xf32>
    %21 = vector.shape_cast %20 : vector<128xf32> to vector<1x128xf32>
    %22 = vector.broadcast %21 : vector<1x128xf32> to vector<10x128xf32>
    %23 = arith.divf %19, %22 : vector<10x128xf32>
    %c0_14 = arith.constant 0 : index
    %c0_15 = arith.constant 0 : index
    %24 = vector.load %arg6[%c0_14, %c0_15] : memref<10x128xf32, #tpu.memory_space<vmem>>, vector<10x128xf32>
    tpu.vector_store %arg6[%c0_14, %c0_15], %23 {strides = array<i32>} : memref<10x128xf32, #tpu.memory_space<vmem>>, vector<10x128xf32>,
    return
  }
  func.func @transform_0(%arg0: i32) -> (i32, i32) {
    %c0_i32 = arith.constant 0 : i32
    %c0_i32_0 = arith.constant 0 : i32
    return %c0_i32, %arg0 : i32, i32
  }
  func.func @transform_1(%arg0: i32) -> (i32, i32) {
    %c0_i32 = arith.constant 0 : i32
    %c0_i32_0 = arith.constant 0 : i32
    %c0_i32_1 = arith.constant 0 : i32
    return %c0_i32, %c0_i32_0 : i32, i32
  }
  func.func @transform_2(%arg0: i32) -> (i32, i32) {
    %c0_i32 = arith.constant 0 : i32
    %c0_i32_0 = arith.constant 0 : i32
    %c0_i32_1 = arith.constant 0 : i32
    return %c0_i32, %c0_i32_0 : i32, i32
  }
  func.func @transform_3(%arg0: i32) -> (i32, i32) {
    %c0_i32 = arith.constant 0 : i32
    %c0_i32_0 = arith.constant 0 : i32
    %c0_i32_1 = arith.constant 0 : i32
    return %c0_i32, %c0_i32_0 : i32, i32
  }
  func.func @transform_4(%arg0: i32) -> (i32, i32) {
    %c0_i32 = arith.constant 0 : i32
    %c0_i32_0 = arith.constant 0 : i32
    %c0_i32_1 = arith.constant 0 : i32
    return %c0_i32, %c0_i32_0 : i32, i32
  }
  func.func @transform_5(%arg0: i32) -> (i32, i32) {
    %c0_i32 = arith.constant 0 : i32
    %c0_i32_0 = arith.constant 0 : i32
    return %c0_i32, %arg0 : i32, i32
  }
}

</mosaic_0001>

<bundles_post_ra>
// kernel: neural_network_forward.1
= control target key start
LH: loop header
LB: loop body
LE: loop exit
PB: predicated region body
PF: predicated region fallthrough
CT: control target
= control target key end

     0   :  { %10 = vsyncpa [#allocation4], 0  ;;  %s964_s0 = inlined_call_operand.vmem [shape: bf16[20,256], index: 0, kind: input, shape index: {}]   ;;  %s965_s1 = inlined_call_operand.vmem [shape: bf16[30,20], index: 1, kind: input, shape index: {}]   ;;  %s966_s2 = inlined_call_operand.vmem [shape: f32[30,1], index: 2, kind: input, shape index: {}]   ;;  %s967_s3 = inlined_call_operand.vmem [shape: f32[10,30], index: 3, kind: input, shape index: {}]   ;;  %s968_s4 = inlined_call_operand.vmem [shape: f32[10,1], index: 4, kind: input, shape index: {}]   ;;  %s969_s5 = inlined_call_operand.hbm [shape: f32[10,256], index: 5, kind: output, shape index: {}]  }
   0x1   :  { %12 = vsyncpa [#allocation4 + $0x1], 0  ;;  %s814_s18 = smov 0   ;;  %s816_s19 = smov 0  }
   0x2   :  { %s818_s20 = smov 0   ;;  %s820_s21 = smov 0  }
   0x3 LB: > { %s596_s22 = sadd.s32 4294967295, %s776_s21   ;;  %s597_s23 = sadd.s32 4294967294, %s776_s21   ;;  %s776_s21 = sphi %s820_s21, %s975_s21   ;;  %s772_s20 = sphi %s818_s20, %s974_s20   ;;  %s768_s19 = sphi %s816_s19, %s973_s19   ;;  %s764_s18 = sphi %s814_s18, %s972_s18  }
   0x4   : > { %s837_s24 = sadd.s32 1, %s776_s21   ;;  %s25_s25 = sadd.s32 1, %s772_s20 }
   0x5   : > { %s22_s26 = ssub.s32 %s776_s21, %s837_s24  ;;  %p32_p0 = scmp.ne.s32.totalorder %s772_s20, %s768_s19 }
   0x6   : > { %p23_p1 = scmp.eq.s32.totalorder %s22_s26, 0  ;;  %p33_p2 = scmp.eq.s32.totalorder %s776_s21, 0 }
   0x7   : > { %p146_p3 = scmp.eq.s32.totalorder %s596_s22, 1  ;;  %p151_p4 = scmp.ne.s32.totalorder %s768_s19, %s764_s18 }
   0x8   : > { %s850_s27 = scalar_select %p23_p1, %s772_s20, %s25_s25  }
   0x9   : > { %p34_p5 = por %p33_p2, %p32_p0  ;;  %p852_p6 = por %p146_p3, %p32_p0 }
   0xa   : > { %p152_p7 = scmp.eq.s32.totalorder %s597_s23, 1  ;;  %p599_p9 = scmp.ge.s32.totalorder %s776_s21, 2 }
   0xc   : > { %p856_p8 = por %p152_p7, %p151_p4  ;;  %180 = sbr.rel (%p599_p9) target bundleno = 26 (0x1a), region = 32 }
  0x13   : > { %183 = sbr.rel (!%p34_p5) target bundleno = 26 (0x1a), region = 36  ;;  %s185_s30 = sand.u32 (%p34_p5), 1, %s772_s20  }
  0x14   : > { %s600_s6 = sshll.u32 (%p34_p5), %s776_s21, 2  ;;  %s656_s7 = smul.u32 (%p34_p5), 12, %s185_s30 }
  0x15   : > { %s189_s10 = scalar_lea.vmem (%p34_p5), %s964_s0, %s600_s6 }
  0x16   : > { %v205_v0 = vld [vmem:[%s189_s10] sm:$0xf] (%p34_p5)  ;;  %v207_v1 = vld [vmem:[%s189_s10 + $0x8] sm:$0xf] (%p34_p5)  ;;  %v209_v2 = vld [vmem:[%s189_s10 + $0x10] sm:$0xf] (%p34_p5) }
  0x17   : > { %s187_s11 = scalar_lea.vmem (%p34_p5), [#allocation2], %s656_s7 }
  0x18   : > { %206 = vst [vmem:[%s187_s11] sm:$0xf] (%p34_p5), %v205_v0  ;;  %208 = vst [vmem:[%s187_s11 + $0x4] sm:$0xf] (%p34_p5), %v207_v1 }
  0x19   : > { %210 = vst [vmem:[%s187_s11 + $0x8] sm:$0xf] (%p34_p5), %v209_v2 }
  0x1a PF: > { %p601_p10 = scmp.ge.s32.totalorder %s776_s21, 1  ;;  %p238_p11 = scmp.lt.s32.totalorder %s776_s21, 3 }
  0x1c   : > { %p239_p12 = pnand %p601_p10, %p238_p11 }
  0x1d   : > { %s871_s12 = sand.u32 (!%p239_p12), 1, %s768_s19   ;;  %v706_v3 = vld [vmem:[%s965_s1] sm:$0xff] (!%p239_p12)   ;;  %vm323_vm0 = vcmask (!%p239_p12), 162816   ;;  %v282_v5 = vld [vmem:[%s966_s2 + $0x10] sm:$0xff] (!%p239_p12)  ;;  %v778_v6 = vmov (!%p239_p12), 0   ;;  %vm330_vm1 = vcmask (!%p239_p12), 1041408  }
  0x1e   : > { %242 = sbr.rel (%p239_p12) target bundleno = 563 (0x233), region = 77  ;;  %630 = vmatprep.mubr.msk.bf16.mxu0 (!%p239_p12), %vm323_vm0, %v706_v3  ;;  %v280_v4 = vld [vmem:[%s966_s2] sm:$0xff] (!%p239_p12)  ;;  %702 = vset.pattern.permute.xlu0 (!%p239_p12), %v778_v6  ;;  %v281_v9 = vld [vmem:[%s966_s2 + $0x8] sm:$0xff] (!%p239_p12)  ;;  %v283_v10 = vld [vmem:[%s966_s2 + $0x18] sm:$0x3f] (!%p239_p12)  ;;  %vm401_vm2 = vcmask (!%p239_p12), 244736  }
  0x1f   : > { %s657_s13 = smul.u32 (!%p239_p12), 12, %s871_s12  ;;  %703 = vset.pattern.permute.xlu1 (!%p239_p12), %v778_v6  ;;  %286 = vperm.xlu0 (!%p239_p12), %702, %v280_v4   ;;  %v390_v12 = vld [vmem:[%s968_s4 + $0x8] sm:$0x3] (!%p239_p12)  ;;  %v389_v14 = vld [vmem:[%s968_s4] sm:$0xff] (!%p239_p12)  ;;  %vm408_vm3 = vcmask (!%p239_p12), 1045504   ;;  %vm779_vm4 = vmmov (!%p239_p12), 1  }
  0x20   : > { %296 = vperm.xlu1 (!%p239_p12), %703, %v282_v5   ;;  %v707_v13 = vld [vmem:[%s965_s1 + $0x8] sm:$0x7f] (!%p239_p12)   ;;  %v387_v15 = vld [vmem:[%s967_s3] sm:$0xff] (!%p239_p12)  ;;  %vm650_vm5 = vmpackc.low (!%p239_p12), %vm408_vm3, %vm779_vm4  ;;  %s613_s7 = sshll.u32 (!%p239_p12), %s596_s22, 7  ;;  %s517_s11 = scalar_lea.sflag (!%p239_p12), [#allocation4], %s871_s12 }
  0x21   : > { %s247_s26 = scalar_lea.vmem (!%p239_p12), [#allocation2], %s657_s13  ;;  %642 = vmatprep.mubr.msk.f32.mxu1 (!%p239_p12), %vm401_vm2, %v387_v15  ;;  %v388_v34 = vld [vmem:[%s967_s3 + $0x8] sm:$0x3] (!%p239_p12)  ;;  %s920_s10 = scalar_lea.hbm (!%p239_p12), %s969_s5, %s613_s7 }
  0x22   : > { %v704_v7 = vld [vmem:[%s247_s26] sm:$0xff] (!%p239_p12)   ;;  %v705_v8 = vld [vmem:[%s247_s26 + $0x8] ss:$0 sps:$4 sm:$0x33] (!%p239_p12)   ;;  %s602_s26 = sshll.u32 (!%p239_p12), %s871_s12, 4  ;;  %s780_s22 = smov (!%p239_p12), [#allocation3]  }
  0x23   : > { %626 = vmatprep.subr.bf16.mxu0 (!%p239_p12), %v704_v7  ;;  %v332_v11 = vsel (!%p239_p12), %vm330_vm1, %v705_v8, 0  ;;  %291 = vperm.xlu0 (!%p239_p12), %702, %v281_v9   ;;  %s271_s30 = scalar_lea.vmem (!%p239_p12), [#allocation3], %s602_s26  ;;  %s718_s14 = sshll.u32 (!%p239_p12), %s780_s22, 4  ;;  %s719_s14 = int_to_ptr.vmem [resolvable:$false] %s718_s14 }
  0x24   : > { %627 = vmatpush3.bf16.msra.mxu0 (!%p239_p12), %v704_v7  ;;  %301 = vperm.xlu1 (!%p239_p12), %703, %v283_v10   ;;  %s529_s6 = sshll.u32 (!%p239_p12), %s271_s30, 4  ;;  %s720_s15 = scalar_lea.vmem (!%p239_p12), %s719_s14, 512  ;;  %s915_s6 = int_to_ptr.vmem [resolvable:$true] %s529_s6 }
  0x25   : > { %655 = vmatprep.subr.msk.bf16.mxu0 %vm330_vm1, %v705_v8  ;;  %s714_s13 = scalar_lea.vmem %s915_s6, 256  ;;  %p721_p2 = scmp.lt.s32.totalorder %s915_s6, %s719_s14 }
  0x26   : > { %p715_p13 = scmp.ne.s32.totalorder %s915_s6, %s714_s13  ;;  %p722_p3 = scmp.lt.s32.totalorder %s720_s15, %s714_s13 }
  0x27   : > { %398 = vperm.xlu0 %702, %v390_v12  }
  0x28   : > { %629 = vmatpush3.bf16.msra.mxu0 %v332_v11  ;;  %393 = vperm.xlu1 %703, %v389_v14   ;;  %p716_p0 = pnand %p715_p13, %p852_p6  ;;  %p723_p4 = por %p722_p3, %p721_p2 }
  0x2a   : > { %p717_p1 = pneg %p716_p0 }
  0x2b   : > { %631 = vmatmul.mubr.msk.bf16.vlgmr.msra.gmra.mrb[0].mxu0 %vm323_vm0, %v707_v13 }
  0x2c   : > { %p724_p5 = pnand %p723_p4, %p717_p1 }
  0x9e   : > { %v287_v17 = vpop.permute.xlu0 %286 }
  0x9f   : > { %v297_v16 = vpop.permute.xlu1 %296 }
  0xa2   : > { %v292_v24 = vpop.permute.xlu0 %291 }
  0xa3   : > { %v302_v21 = vpop.permute.xlu1 %301 }
  0xa6   : > { %v399_v35 = vpop.permute.xlu0 %398 }
  0xa7   : > { %v394_v37 = vpop.permute.xlu1 %393 }
  0xfe   : > { %v632_v18 = vpop.f32.mrb[0].mxu0 }
  0xff   : > { %v377_v19 = vadd.f32 %v632_v18, %v297_v16  ;;  %v368_v20 = vpop.f32.mrb[1].mxu0 }
 0x100   : > { %v369_v22 = vadd.f32 %v368_v20, %v287_v17  ;;  %v633_v23 = vpop.f32.mrb[2].mxu0 }
 0x101   : > { %v380_v25 = vadd.f32 %v633_v23, %v302_v21  ;;  %v371_v26 = vpop.f32.mrb[3].mxu0  ;;  %v385_v28 = vmax.f32 %v377_v19, 0.0 }
 0x102   : > { %v372_v27 = vadd.f32 %v371_v26, %v292_v24  ;;  %v383_v30 = vmax.f32 %v369_v22, 0.0 }
 0x103   : > { %v386_v29 = vmax.f32 %v380_v25, 0.0 }
 0x104   : > { %v384_v31 = vmax.f32 %v372_v27, 0.0 }
 0x105   : > { %v649_v32 = vpack.c.bf16 %v386_v29, %v385_v28 }
 0x106   : > { %v645_v33 = vpack.c.bf16 %v384_v31, %v383_v30 }
 0x108   : > { %646 = vmatprep.subr.bf16.mxu1 %v645_v33 }
 0x109   : > { %648 = vmatpush3.bf16.msra.mxu1 %v645_v33 }
 0x10a   : > { %651 = vmatprep.subr.msk.bf16.mxu1 %vm650_vm5, %v649_v32 }
 0x10d   : > { %654 = vmatpush3.bf16.msk.msra.mxu1 %vm650_vm5, %v649_v32 }
 0x110   : > { %643 = vmatmul.mubr.msk.f32.vlgmr.msra.gmra.mrb[0].mxu1 %vm401_vm2, %v388_v34 }
 0x1e3   : > { %v644_v36 = vpop.f32.mrb[0].mxu1 }
 0x1e4   : > { %v484_v38 = vadd.f32 %v644_v36, %v399_v35  ;;  %v478_v39 = vpop.f32.mrb[1].mxu1 }
 0x1e5   : > { %v479_v40 = vadd.f32 %v478_v39, %v394_v37 }
 0x1e6   : > { %v488_v41 = vmax.f32 %v484_v38, 0.0 }
 0x1e7   : > { %v487_v42 = vmax.f32 %v479_v40, 0.0 }
 0x1e8   : > { %v489_v43 = vsel %vm330_vm1, %v488_v41, -inf }
 0x1e9   : > { %v490_v44 = vmax.f32 %v487_v42, %v489_v43 }
 0x1eb   : > { %v491_v45 = vrot.slane %v490_v44, 4 }
 0x1ed   : > { %v492_v46 = vmax.f32 %v490_v44, %v491_v45 }
 0x1ef   : > { %v493_v47 = vrot.slane %v492_v46, 2 }
 0x1f1   : > { %v494_v48 = vmax.f32 %v492_v46, %v493_v47 }
 0x1f3   : > { %v495_v49 = vrot.slane %v494_v48, 1 }
 0x1f5   : > { %v496_v50 = vmax.f32 %v494_v48, %v495_v49 }
 0x1f7   : > { %v497_v51 = vsub.f32 %v487_v42, %v496_v50  ;;  %v498_v52 = vsub.f32 %v488_v41, %v496_v50 }
 0x1f9   : > { %v499_v53 = vmul.f32 1.442695, %v497_v51  ;;  %v501_v54 = vmul.f32 1.442695, %v498_v52 }
 0x1fb   : > { %708 = vpow2.f32 %v499_v53 }
 0x1fc   : > { %710 = vpow2.f32 %v501_v54 }
 0x205   : > { %v709_v55 = vpop.eup %708 }
 0x206   : > { %v711_v56 = vpop.eup %710 }
 0x207   : > { %v503_v57 = vsel %vm330_vm1, %v711_v56, 0.0 }
 0x208   : > { %v504_v58 = vadd.f32 %v709_v55, %v503_v57 }
 0x20a   : > { %v505_v59 = vrot.slane %v504_v58, 4 }
 0x20c   : > { %v506_v60 = vadd.f32 %v505_v59, %v504_v58 }
 0x20e   : > { %v507_v61 = vrot.slane %v506_v60, 2 }
 0x210   : > { %v508_v62 = vadd.f32 %v507_v61, %v506_v60 }
 0x212   : > { %v509_v63 = vrot.slane %v508_v62, 1 }
 0x214   : > { %v510_v0 = vadd.f32 %v509_v63, %v508_v62 }
 0x216   : > { %712 = vrcp.f32 %v510_v0 }
 0x220   : > { %v713_v1 = vpop.eup %712 }
 0x221   : > { %v512_v2 = vmul.f32 %v713_v1, %v709_v55  ;;  %v513_v3 = vmul.f32 %v713_v1, %v711_v56 }
 0x223   : > { %514 = vst [vmem:[%s271_s30] sm:$0xff] %v512_v2  ;;  %515 = vst [vmem:[%s271_s30 + $0x8] sm:$0x3] %v513_v3 }
 0x224   : > { %727 = shalt.err (!%p724_p5)
}
 0x225   : > { %s728_s16 = scalar_lea.hbm %s920_s10, 256  ;;  %s732_s25 = scalar_lea.hbm %s969_s5, 512 }
 0x226   : > { %p729_p7 = scmp.ne.s32.totalorder %s920_s10, %s728_s16  ;;  %p733_p12 = scmp.lt.u32.totalorder %s920_s10, %s969_s5 }
 0x227   : > { %p734_p13 = scmp.lt.u32.totalorder %s732_s25, %s728_s16  ;;  %p736_p1 = scmp.lt.u32.totalorder %s728_s16, %s920_s10 }
 0x228   : > { %p730_p10 = pnand %p729_p7, %p852_p6 }
 0x229   : > { %p735_p0 = por %p734_p13, %p733_p12 }
 0x22a   : > { %p731_p11 = pneg %p730_p10 }
 0x22b   : > { %p737_p2 = por %p736_p1, %p735_p0 }
 0x22d   : > { %p738_p3 = pnand %p737_p2, %p731_p11 }
 0x22f   : > { %741 = shalt.err (!%p738_p3)
}
 0x230   : > { %s781_s7 = smov 128   ;;  %s782_s8 = smov 256  }
 0x231   : > { %s783_s9 = smov 8  }
 0x232   : > { %658 = dma.vmem_to_hbm [thread:$0]  (%p852_p6), %s915_s6, 256, %s920_s10, %s517_s11, %s781_s7, %s782_s8, %s783_s9  }
 0x233 PF: > { %s544_s13 = sand.u32 1, %s764_s18   ;;  %p661_p4 = pnand %p599_p9, %p856_p8 }
 0x234   : > { %s545_s22 = scalar_lea.sflag [#allocation4], %s544_s13 }
 0x235   : > { %759 = dma.done.wait (!%p661_p4), %s545_s22, 256  }
 0x236   : > { %761 = vsyncadd (!%p661_p4), %s545_s22, 4294967040  ;;  %p15_p5 = scmp.ge.s32.totalorder %s837_s24, 4   ;;  %s972_s18 = smov %s768_s19 }
 0x237   : > { %s973_s19 = smov %s772_s20  ;;  %s974_s20 = smov %s850_s27 }
 0x238   : > { %s975_s21 = smov %s837_s24  ;;  %17 = sbr.rel (!%p15_p5) target bundleno = 3 (0x3), region = 121 }
 0x23f   :  { %550 = vsyncpa [#allocation4], 1 }
 0x240   :  { %552 = vsyncpa [#allocation4 + $0x1], 1 }

</bundles_post_ra>
